<compile_context>
chip_gen: v5e
topology: v5e:2x2
jax: 0.10.0
libtpu: 0.0.40
codegen_flags: <defaults>
</compile_context>

<pallas_src>
import functools

import jax
import jax.numpy as jnp
from jax.experimental import pallas as pl
from jax.experimental.pallas import tpu as pltpu

_EPS = 1e-5
_FUSED_MAX_BYTES = 8 * 1024 * 1024    # fully-fused single-block path threshold
_VMEM_TILE_BUDGET = 8 * 1024 * 1024   # budget for double-buffered in+out tiles
                                      # (fits v5e 16 MiB / v7x 32 MiB scoped VMEM)


# --------------------------- fused small-N path -----------------------------

def _fused_update_kernel(count_ref, x_ref, mean_ref, var_ref,
                         out_ref, new_mean_ref, new_var_ref):
    """Single block: batch stats (centered) + running-stat merge + normalize."""
    xb = x_ref[...].astype(jnp.float32)
    n2 = jnp.float32(xb.shape[0])
    m2 = jnp.sum(xb, axis=0, keepdims=True) * (1.0 / n2)            # (1, F)
    centered = xb - m2
    # Unbiased variance, matches torch.var (NaN for N==1, same as torch).
    v2 = jnp.sum(centered * centered, axis=0, keepdims=True) / (n2 - 1.0)

    n1 = count_ref[0].astype(jnp.float32)
    m1 = mean_ref[...]
    v1 = var_ref[...]
    n = n1 + n2
    new_mean = (n1 * m1 + n2 * m2) / n
    d1 = v1 + jnp.square(new_mean - m1)
    d2 = v2 + jnp.square(new_mean - m2)
    new_var = (n1 * d1 + n2 * d2) / n

    inv_std = jax.lax.rsqrt(new_var + _EPS)
    out_ref[...] = ((xb - new_mean) * inv_std).astype(out_ref.dtype)
    new_mean_ref[...] = new_mean
    new_var_ref[...] = new_var


def _fused_update(x, count, mean, var):
    N, F = x.shape
    out, new_mean, new_var = pl.pallas_call(
        _fused_update_kernel,
        out_shape=(jax.ShapeDtypeStruct((N, F), x.dtype),
                   jax.ShapeDtypeStruct((1, F), jnp.float32),
                   jax.ShapeDtypeStruct((1, F), jnp.float32)),
        in_specs=[pl.BlockSpec(memory_space=pltpu.MemorySpace.SMEM),
                  pl.BlockSpec(memory_space=pltpu.MemorySpace.VMEM),
                  pl.BlockSpec(memory_space=pltpu.MemorySpace.VMEM),
                  pl.BlockSpec(memory_space=pltpu.MemorySpace.VMEM)],
        out_specs=(pl.BlockSpec(memory_space=pltpu.MemorySpace.VMEM),
                   pl.BlockSpec(memory_space=pltpu.MemorySpace.VMEM),
                   pl.BlockSpec(memory_space=pltpu.MemorySpace.VMEM)),
    )(count.astype(jnp.int32),
      x,
      mean.reshape(1, F).astype(jnp.float32),
      var.reshape(1, F).astype(jnp.float32))
    # TODO(synk): torch keeps count as int64; int32 here (JAX x64 is off).
    new_count = count + N
    return out, new_count, new_mean.reshape(F), new_var.reshape(F)


# ----------------------------- tiled large-N path ---------------------------

def _make_stats_kernel(total_rows, row_tile):
    """Accumulate per-column sum and sum-of-squares over row tiles."""
    needs_mask = (total_rows % row_tile) != 0

    def kernel(x_ref, sum_ref, sumsq_ref):
        i = pl.program_id(0)

        @pl.when(i == 0)
        def _():
            sum_ref[...] = jnp.zeros_like(sum_ref)
            sumsq_ref[...] = jnp.zeros_like(sumsq_ref)

        xb = x_ref[...].astype(jnp.float32)
        if needs_mask:
            rows = jax.lax.broadcasted_iota(jnp.int32, xb.shape, 0) + i * row_tile
            xb = jnp.where(rows < total_rows, xb, 0.0)
        sum_ref[...] += jnp.sum(xb, axis=0, keepdims=True)
        sumsq_ref[...] += jnp.sum(xb * xb, axis=0, keepdims=True)

    return kernel


def _normalize_kernel(mean_ref, inv_std_ref, x_ref, out_ref):
    """out = (x - mean) * inv_std  (mean / inv_std are broadcast rows)."""
    xb = x_ref[...].astype(jnp.float32)
    out_ref[...] = ((xb - mean_ref[...]) * inv_std_ref[...]).astype(out_ref.dtype)


def _lane_fold(N, F):
    """k such that x.reshape(N//k, k*F) fills the 128-lane vreg (1 if not possible)."""
    if F >= 128 or (128 % F) != 0:
        return 1
    k = 128 // F
    return k if (N % k) == 0 else 1


def _pick_row_tile(n_rows, width, itemsize, max_tile):
    """Largest row tile (multiple of 8) keeping double-buffered in+out in budget."""
    per_row = 4 * width * itemsize            # 2 buffers x (input + output)
    rt = min(max_tile, max(8, _VMEM_TILE_BUDGET // max(per_row, 1)))
    rt -= rt % 8
    rt = max(rt, 8)
    if rt >= n_rows:
        return n_rows                         # single full-extent block (exempt from /8)
    return rt


# --------------------------------- wrapper ----------------------------------

def input_norm_forward(x, count, mean, var, *, training=True, update=True,
                       max_row_tile=1024, fused_bytes_limit=_FUSED_MAX_BYTES):
    """Pallas implementation of InputNorm.forward.

    Returns (normalized_x, (new_count, new_mean, new_var))."""
    N, F = x.shape
    itemsize = jnp.dtype(x.dtype).itemsize
    x_bytes = N * F * itemsize

    if training and update:
        if x_bytes <= fused_bytes_limit:
            out, new_count, new_mean, new_var = _fused_update(x, count, mean, var)
            return out, (new_count, new_mean, new_var)

        # ---- pass 1: batch sums (lane-dense folded, large row tiles) ----
        k = _lane_fold(N, F)
        Nf, Ff = N // k, k * F
        xf = x.reshape(Nf, Ff)
        rt = _pick_row_tile(Nf, Ff, itemsize, max_row_tile)
        grid = (pl.cdiv(Nf, rt),)

        sums, sumsqs = pl.pallas_call(
            _make_stats_kernel(Nf, rt),
            out_shape=(jax.ShapeDtypeStruct((1, Ff), jnp.float32),
                       jax.ShapeDtypeStruct((1, Ff), jnp.float32)),
            grid_spec=pltpu.PrefetchScalarGridSpec(
                num_scalar_prefetch=0,
                grid=grid,
                in_specs=[pl.BlockSpec((rt, Ff), lambda i: (i, 0))],
                out_specs=(pl.BlockSpec((1, Ff), lambda i: (0, 0)),
                           pl.BlockSpec((1, Ff), lambda i: (0, 0)))),
            compiler_params=pltpu.CompilerParams(
                dimension_semantics=("arbitrary",)),
        )(xf)

        # ---- tiny O(F) running-stat merge (plain JAX glue) ----
        sum_f = sums.reshape(k, F).sum(axis=0)
        sumsq_f = sumsqs.reshape(k, F).sum(axis=0)
        n1 = count.astype(jnp.float32)
        n2 = jnp.float32(N)
        m2 = sum_f / n2
        # TODO(synk): sumsq - n*m^2 is cancellation-prone when |mean| >> std; a
        # centered second pass would match torch.var bit-for-bit more closely.
        v2 = (sumsq_f - n2 * m2 * m2) / (n2 - 1.0)
        new_count = count + N
        nf = new_count.astype(jnp.float32)
        new_mean = (n1 * mean.astype(jnp.float32) + n2 * m2) / nf
        d1 = var.astype(jnp.float32) + jnp.square(new_mean - mean)
        d2 = v2 + jnp.square(new_mean - m2)
        new_var = (n1 * d1 + n2 * d2) / nf
    else:
        new_count, new_mean, new_var = count, mean, var

    # ---- normalize pass: out = (x - mean) * rsqrt(var + eps) ----
    inv_std = jax.lax.rsqrt(new_var.astype(jnp.float32) + _EPS)
    k = _lane_fold(N, F)
    Nf, Ff = N // k, k * F
    xf = x.reshape(Nf, Ff)
    mean_row = jnp.tile(new_mean.astype(jnp.float32).reshape(1, F), (1, k))
    inv_row = jnp.tile(inv_std.reshape(1, F), (1, k))

    rt = _pick_row_tile(Nf, Ff, itemsize, max_row_tile)
    grid = (pl.cdiv(Nf, rt),)
    outf = pl.pallas_call(
        _normalize_kernel,
        out_shape=jax.ShapeDtypeStruct((Nf, Ff), x.dtype),
        grid_spec=pltpu.PrefetchScalarGridSpec(
            num_scalar_prefetch=0,
            grid=grid,
            in_specs=[pl.BlockSpec((1, Ff), lambda i: (0, 0)),
                      pl.BlockSpec((1, Ff), lambda i: (0, 0)),
                      pl.BlockSpec((rt, Ff), lambda i: (i, 0))],
            out_specs=pl.BlockSpec((rt, Ff), lambda i: (i, 0))),
        compiler_params=pltpu.CompilerParams(
            dimension_semantics=("parallel",)),
    )(mean_row, inv_row, xf)

    return outf.reshape(N, F), (new_count, new_mean, new_var)


# -------------------------------- reference ---------------------------------

def _reference_forward(x, count, mean, var, training=True, update=True):
    """Pure-JAX reference mirroring the PyTorch module."""
    if training and update:
        n1 = count.astype(jnp.float32)
        n2 = jnp.float32(x.shape[0])
        m2 = x.mean(axis=0)
        v2 = x.var(axis=0, ddof=1)
        n = count + x.shape[0]
        nf = n.astype(jnp.float32)
        new_mean = (n1 * mean + n2 * m2) / nf
        d1 = var + jnp.square(new_mean - mean)
        d2 = v2 + jnp.square(new_mean - m2)
        new_var = (n1 * d1 + n2 * d2) / nf
    else:
        n, new_mean, new_var = count, mean, var
    out = (x - new_mean[None, :]) / jnp.sqrt(new_var[None, :] + _EPS)
    return out, (n, new_mean, new_var)


if __name__ == "__main__":
    key = jax.random.PRNGKey(0)

    def check(N, F, fused_bytes_limit, max_row_tile=1024, training=True):
        kx = jax.random.fold_in(key, N * 131 + F)
        x = jax.random.normal(kx, (N, F), jnp.float32) * 3.0 + 1.5
        # Non-trivial prior running stats so the merge path is exercised.
        count = jnp.full((1,), 7, jnp.int32)
        mean = jnp.full((F,), 0.25, jnp.float32)
        var = jnp.full((F,), 2.0, jnp.float32)

        fwd = jax.jit(functools.partial(
            input_norm_forward, training=training, update=True,
            max_row_tile=max_row_tile, fused_bytes_limit=fused_bytes_limit))
        out, (nc, nm, nv) = fwd(x, count, mean, var)
        out = jax.block_until_ready(out)

        ref_out, (rc, rm, rv) = _reference_forward(
            x, count, mean, var, training=training, update=True)
        assert jnp.allclose(out, ref_out, atol=1e-4, rtol=1e-4), (N, F)
        assert int(nc[0]) == int(rc[0]), (N, F)
        assert jnp.allclose(nm, rm, atol=1e-5, rtol=1e-5), (N, F)
        assert jnp.allclose(nv, rv, atol=1e-4, rtol=1e-4), (N, F)

    # Small fused single-block path (module-typical shape).
    check(16, 32, fused_bytes_limit=_FUSED_MAX_BYTES)
    # Tiled two-pass path, lane-folded (F=32 -> 128-wide blocks), divisible rows.
    check(4096, 32, fused_bytes_limit=0, max_row_tile=256)
    # Tiled path with a ragged tail tile (masked stats accumulation).
    check(4104, 32, fused_bytes_limit=0, max_row_tile=256)
    # Inference / no-update path (normalize only, no fold since 128 % 48 != 0).
    check(64, 48, fused_bytes_limit=0, training=False)

    print("KERNEL_OK")
</pallas_src>

<mosaic_0001>
module attributes {stable_mosaic.version = 11 : i64} {
  func.func @_fused_update_kernel(%arg0: memref<1xi32, #tpu.memory_space<smem>>, %arg1: memref<16x32xf32, #tpu.memory_space<vmem>>, %arg2: memref<1x32xf32, #tpu.memory_space<vmem>>, %arg3: memref<1x32xf32, #tpu.memory_space<vmem>>, %arg4: memref<16x32xf32, #tpu.memory_space<vmem>>, %arg5: memref<1x32xf32, #tpu.memory_space<vmem>>, %arg6: memref<1x32xf32, #tpu.memory_space<vmem>>) attributes {dimension_semantics = [], scalar_prefetch = 0 : i64, scratch_operands = 0 : i64, tpu.core_type = #tpu.core_type<tc>} {
    %c0 = arith.constant 0 : index
    %c0_0 = arith.constant 0 : index
    %0 = vector.load %arg1[%c0, %c0_0] : memref<16x32xf32, #tpu.memory_space<vmem>>, vector<16x32xf32>
    %cst = arith.constant dense<0.000000e+00> : vector<32xf32>
    %1 = vector.multi_reduction <add>, %0, %cst [0] : vector<16x32xf32> to vector<32xf32>
    %2 = vector.shape_cast %1 : vector<32xf32> to vector<1x32xf32>
    %cst_1 = arith.constant 1.000000e+00 : f32
    %cst_2 = arith.constant 1.600000e+01 : f32
    %3 = arith.divf %cst_1, %cst_2 : f32
    %4 = vector.broadcast %3 : f32 to vector<1x32xf32>
    %5 = arith.mulf %2, %4 : vector<1x32xf32>
    %6 = vector.broadcast %5 : vector<1x32xf32> to vector<16x32xf32>
    %7 = arith.subf %0, %6 : vector<16x32xf32>
    %8 = arith.mulf %7, %7 : vector<16x32xf32>
    %cst_3 = arith.constant dense<0.000000e+00> : vector<32xf32>
    %9 = vector.multi_reduction <add>, %8, %cst_3 [0] : vector<16x32xf32> to vector<32xf32>
    %10 = vector.shape_cast %9 : vector<32xf32> to vector<1x32xf32>
    %cst_4 = arith.constant 1.600000e+01 : f32
    %cst_5 = arith.constant 1.000000e+00 : f32
    %11 = arith.subf %cst_4, %cst_5 : f32
    %12 = vector.broadcast %11 : f32 to vector<1x32xf32>
    %13 = arith.divf %10, %12 : vector<1x32xf32>
    %c0_6 = arith.constant 0 : index
    %14 = memref.load %arg0[%c0_6] : memref<1xi32, #tpu.memory_space<smem>>
    %15 = arith.sitofp %14 : i32 to f32
    %c0_7 = arith.constant 0 : index
    %c0_8 = arith.constant 0 : index
    %16 = vector.load %arg2[%c0_7, %c0_8] : memref<1x32xf32, #tpu.memory_space<vmem>>, vector<1x32xf32>
    %c0_9 = arith.constant 0 : index
    %c0_10 = arith.constant 0 : index
    %17 = vector.load %arg3[%c0_9, %c0_10] : memref<1x32xf32, #tpu.memory_space<vmem>>, vector<1x32xf32>
    %cst_11 = arith.constant 1.600000e+01 : f32
    %18 = arith.addf %15, %cst_11 : f32
    %19 = vector.broadcast %15 : f32 to vector<1x32xf32>
    %20 = arith.mulf %19, %16 : vector<1x32xf32>
    %cst_12 = arith.constant 1.600000e+01 : f32
    %21 = vector.broadcast %cst_12 : f32 to vector<1x32xf32>
    %22 = arith.mulf %21, %5 : vector<1x32xf32>
    %23 = arith.addf %20, %22 : vector<1x32xf32>
    %24 = vector.broadcast %18 : f32 to vector<1x32xf32>
    %25 = arith.divf %23, %24 : vector<1x32xf32>
    %26 = arith.subf %25, %16 : vector<1x32xf32>
    %27 = arith.mulf %26, %26 : vector<1x32xf32>
    %28 = arith.addf %17, %27 : vector<1x32xf32>
    %29 = arith.subf %25, %5 : vector<1x32xf32>
    %30 = arith.mulf %29, %29 : vector<1x32xf32>
    %31 = arith.addf %13, %30 : vector<1x32xf32>
    %32 = vector.broadcast %15 : f32 to vector<1x32xf32>
    %33 = arith.mulf %32, %28 : vector<1x32xf32>
    %cst_13 = arith.constant 1.600000e+01 : f32
    %34 = vector.broadcast %cst_13 : f32 to vector<1x32xf32>
    %35 = arith.mulf %34, %31 : vector<1x32xf32>
    %36 = arith.addf %33, %35 : vector<1x32xf32>
    %37 = vector.broadcast %18 : f32 to vector<1x32xf32>
    %38 = arith.divf %36, %37 : vector<1x32xf32>
    %cst_14 = arith.constant 9.99999974E-6 : f32
    %39 = vector.broadcast %cst_14 : f32 to vector<1x32xf32>
    %40 = arith.addf %38, %39 : vector<1x32xf32>
    %41 = math.rsqrt %40 : vector<1x32xf32>
    %42 = vector.broadcast %25 : vector<1x32xf32> to vector<16x32xf32>
    %43 = arith.subf %0, %42 : vector<16x32xf32>
    %44 = vector.broadcast %41 : vector<1x32xf32> to vector<16x32xf32>
    %45 = arith.mulf %43, %44 : vector<16x32xf32>
    %c0_15 = arith.constant 0 : index
    %c0_16 = arith.constant 0 : index
    %46 = vector.load %arg4[%c0_15, %c0_16] : memref<16x32xf32, #tpu.memory_space<vmem>>, vector<16x32xf32>
    tpu.vector_store %arg4[%c0_15, %c0_16], %45 {strides = array<i32>} : memref<16x32xf32, #tpu.memory_space<vmem>>, vector<16x32xf32>,
    %c0_17 = arith.constant 0 : index
    %c0_18 = arith.constant 0 : index
    %47 = vector.load %arg5[%c0_17, %c0_18] : memref<1x32xf32, #tpu.memory_space<vmem>>, vector<1x32xf32>
    tpu.vector_store %arg5[%c0_17, %c0_18], %25 {strides = array<i32>} : memref<1x32xf32, #tpu.memory_space<vmem>>, vector<1x32xf32>,
    %c0_19 = arith.constant 0 : index
    %c0_20 = arith.constant 0 : index
    %48 = vector.load %arg6[%c0_19, %c0_20] : memref<1x32xf32, #tpu.memory_space<vmem>>, vector<1x32xf32>
    tpu.vector_store %arg6[%c0_19, %c0_20], %38 {strides = array<i32>} : memref<1x32xf32, #tpu.memory_space<vmem>>, vector<1x32xf32>,
    return
  }
}

</mosaic_0001>

<bundles_post_ra>
// kernel: input_norm_forward.1
= control target key start
LH: loop header
LB: loop body
LE: loop exit
PB: predicated region body
PF: predicated region fallthrough
CT: control target
= control target key end

     0   :  { %13 = vsyncpa [#allocation4], 0  ;;  %s386_s0 = inlined_call_operand.<no memory space> [shape: s32[1], index: 0, kind: input, shape index: {}]   ;;  %s387_s1 = inlined_call_operand.hbm [shape: f32[16,32], index: 1, kind: input, shape index: {}]   ;;  %s388_s2 = inlined_call_operand.vmem [shape: f32[1,32], index: 2, kind: input, shape index: {}]   ;;  %s389_s3 = inlined_call_operand.vmem [shape: f32[1,32], index: 3, kind: input, shape index: {}]   ;;  %s390_s4 = inlined_call_operand.hbm [shape: f32[16,32], index: 4, kind: output, shape index: {0}]   ;;  %s391_s5 = inlined_call_operand.hbm [shape: f32[1,32], index: 5, kind: output, shape index: {1}]   ;;  %s392_s6 = inlined_call_operand.hbm [shape: f32[1,32], index: 6, kind: output, shape index: {2}]  }
   0x1   :  { %14 = vsyncpa [#allocation5], 0 }
   0x2   :  { %15 = vsyncpa [#allocation8], 0  ;;  %s22_s23 = sshll.u32 %s387_s1, 4  ;;  %s299_s24 = smov [#allocation3]   ;;  %s23_s23 = int_to_ptr.hbm [resolvable:$true] %s22_s23 }
   0x3   :  { %s24_s25 = sshll.u32 %s299_s24, 4  ;;  %s300_s26 = smov 128   ;;  %s25_s25 = int_to_ptr.vmem [resolvable:$true] %s24_s25 }
   0x4   :  { %s301_s27 = smov 8  }
   0x5   :  { %30 = dma.hbm_to_vmem [thread:$0]  %s23_s23, 256, %s25_s25, [#allocation4], %s300_s26, %s300_s26, %s301_s27  }
   0x6   :  { %293 = dma.done.wait [#allocation4], 256  }
   0x7   :  { %294 = vsyncadd [#allocation4], 4294967040  ;;  %s74_s30 = scvt.s32.f32 %s386_s0  ;;  %vm41_vm0 = vcmask 261120   ;;  %v350_v1 = vld [vmem:[#allocation3] sm:$0xff]  ;;  %v352_v2 = vld [vmem:[#allocation3 + $0x8] sm:$0xff]  ;;  %v302_v12 = vmov 15.0  }
   0x8   :  { %v42_v3 = vsel %vm41_vm0, %v350_v1, 0.0  ;;  %v43_v4 = vsel %vm41_vm0, %v352_v2, 0.0  ;;  %v75_v19 = vld [vmem:[%s388_s2] sm:$0x1]  ;;  %s303_s8 = smov [#allocation7]   ;;  %s154_s11 = sshll.u32 %s391_s5, 4  ;;  %s155_s11 = int_to_ptr.hbm [resolvable:$true] %s154_s11 }
   0x9   :  { %s77_s7 = sadd.f32 16.0, %s74_s30  ;;  %v44_v5 = vadd.f32 %v43_v4, %v42_v3  ;;  %v78_v20 = vstv %s74_s30  ;;  %s152_s9 = sshll.u32 %s303_s8, 4  ;;  %vm131_vm5 = vcmask 253952   ;;  %v76_v49 = vld [vmem:[%s389_s3] sm:$0x1]  ;;  %s153_s9 = int_to_ptr.vmem [resolvable:$true] %s152_s9 }
   0xa   :  { %v79_v25 = vmul.f32 %v78_v20, %v75_v19  ;;  %s304_s13 = smov [#allocation9]   ;;  %s165_s17 = sshll.u32 %s392_s6, 4  ;;  %s166_s17 = int_to_ptr.hbm [resolvable:$true] %s165_s17 }
   0xb   :  { %v82_v0 = vstv %s77_s7  ;;  %v45_v7 = vrot.slane %v44_v5, 4  ;;  %s163_s14 = sshll.u32 %s304_s13, 4  ;;  %s305_s3 = smov [#allocation6]   ;;  %s164_s14 = int_to_ptr.vmem [resolvable:$true] %s163_s14 }
   0xc   :  { %191 = vrcp.f32 %v82_v0  ;;  %vm88_vm1 = vweird.f32 %v82_v0  ;;  %v94_v15 = vand.u32 2147483648, %v82_v0  ;;  %v92_v18 = vand.u32 2147483647, %v82_v0  ;;  %s138_s6 = sshll.u32 %s305_s3, 4  ;;  %s140_s20 = sshll.u32 %s390_s4, 4  ;;  %s139_s6 = int_to_ptr.vmem [resolvable:$true] %s138_s6  ;;  %s141_s20 = int_to_ptr.hbm [resolvable:$true] %s140_s20 }
   0xd   :  { %v46_v9 = vadd.f32 %v45_v7, %v44_v5  ;;  %193 = vrcp.f32 %v302_v12 }
   0xe   :  { %v95_v23 = vor.u32 1.1754944e-38, %v94_v15  ;;  %vm93_vm4 = vcmp.eq.f32.partialorder %v92_v18, 8.507059e+37 }
   0xf   :  { %v47_v11 = vrot.slane %v46_v9, 2 }
  0x11   :  { %v48_v14 = vadd.f32 %v47_v11, %v46_v9 }
  0x12   :  { %v192_v6 = vpop.eup %191 }
  0x13   :  { %v84_v8 = vmul.f32 %v192_v6, %v82_v0  ;;  %vm89_vm2 = vweird.f32 %v192_v6  ;;  %v49_v16 = vrot.slane %v48_v14, 1  ;;  %v194_v22 = vpop.eup %193 }
  0x14   :  { %vm90_vm3 = vmor %vm88_vm1, %vm89_vm2  ;;  %v66_v29 = vmul.f32 15.0, %v194_v22  ;;  %vm70_vm6 = vweird.f32 %v194_v22 }
  0x15   :  { %v85_v10 = vsub.f32 1.0, %v84_v8  ;;  %v50_v21 = vadd.f32 %v49_v16, %v48_v14 }
  0x16   :  { %v67_v37 = vsub.f32 1.0, %v66_v29 }
  0x17   :  { %v86_v13 = vmul.f32 %v192_v6, %v85_v10  ;;  %v51_v24 = vmul.f32 0.0625, %v50_v21 }
  0x18   :  { %v68_v41 = vmul.f32 %v194_v22, %v67_v37 }
  0x19   :  { %v87_v17 = vadd.f32 %v192_v6, %v86_v13  ;;  %v52_v27 = vsub.f32 %v350_v1, %v51_v24  ;;  %v53_v28 = vsub.f32 %v352_v2, %v51_v24  ;;  %v80_v30 = vmul.f32 16.0, %v51_v24 }
  0x1a   :  { %v69_v45 = vadd.f32 %v194_v22, %v68_v41 }
  0x1b   :  { %v91_v26 = vsel %vm90_vm3, %v192_v6, %v87_v17  ;;  %v54_v32 = vmul.f32 %v52_v27, %v52_v27  ;;  %v55_v33 = vmul.f32 %v53_v28, %v53_v28  ;;  %v81_v34 = vadd.f32 %v80_v30, %v79_v25 }
  0x1c   :  { %v96_v31 = vsel %vm93_vm4, %v95_v23, %v91_v26  ;;  %v71_v51 = vsel %vm70_vm6, %v194_v22, %v69_v45 }
  0x1d   :  { %v56_v35 = vsel %vm41_vm0, %v54_v32, 0.0  ;;  %v57_v36 = vsel %vm41_vm0, %v55_v33, 0.0  ;;  %v97_v38 = vmul.f32 %v96_v31, %v81_v34 }
  0x1e   :  { %v58_v39 = vadd.f32 %v57_v36, %v56_v35 }
  0x1f   :  { %132 = vst.msk [vmem:[#allocation7] sm:$0x1] %vm131_vm5, %v97_v38  ;;  %v98_v43 = vsub.f32 %v97_v38, %v75_v19  ;;  %v101_v48 = vsub.f32 %v97_v38, %v51_v24  ;;  %v120_v4 = vperm.slane %v97_v38, 0 }
  0x20   :  { %v59_v40 = vrot.slane %v58_v39, 4  ;;  %157 = dma.vmem_to_hbm [thread:$0]  %s153_s9, 16, %s155_s11, [#allocation8]  }
  0x21   :  { %v99_v47 = vmul.f32 %v98_v43, %v98_v43  ;;  %v102_v54 = vmul.f32 %v101_v48, %v101_v48  ;;  %v122_v7 = vsub.f32 %v350_v1, %v120_v4  ;;  %v123_v8 = vsub.f32 %v352_v2, %v120_v4 }
  0x22   :  { %v60_v42 = vadd.f32 %v59_v40, %v58_v39 }
  0x23   :  { %v100_v53 = vadd.f32 %v99_v47, %v76_v49 }
  0x24   :  { %v61_v44 = vrot.slane %v60_v42, 2 }
  0x25   :  { %v104_v57 = vmul.f32 %v100_v53, %v78_v20 }
  0x26   :  { %v62_v46 = vadd.f32 %v61_v44, %v60_v42 }
  0x28   :  { %v63_v50 = vrot.slane %v62_v46, 1 }
  0x2a   :  { %v64_v52 = vadd.f32 %v63_v50, %v62_v46 }
  0x2c   :  { %v72_v55 = vmul.f32 %v71_v51, %v64_v52 }
  0x2e   :  { %v103_v56 = vadd.f32 %v102_v54, %v72_v55 }
  0x30   :  { %v105_v58 = vmul.f32 16.0, %v103_v56 }
  0x32   :  { %v106_v59 = vadd.f32 %v105_v58, %v104_v57 }
  0x34   :  { %v107_v60 = vmul.f32 %v106_v59, %v96_v31 }
  0x36   :  { %v108_v61 = vadd.f32 1e-05, %v107_v60  ;;  %133 = vst.msk [vmem:[#allocation9] sm:$0x1] %vm131_vm5, %v107_v60 }
  0x37   :  { %168 = dma.vmem_to_hbm [thread:$0]  %s164_s14, 16, %s166_s17, [#allocation8]  }
  0x38   :  { %195 = vrsqrt.f32 %v108_v61  ;;  %vm115_vm7 = vweird.f32 %v108_v61 }
  0x3e   :  { %v196_v62 = vpop.eup %195 }
  0x3f   :  { %v110_v63 = vmul.f32 %v196_v62, %v108_v61  ;;  %vm116_vm8 = vweird.f32 %v196_v62 }
  0x40   :  { %vm117_vm9 = vmor %vm115_vm7, %vm116_vm8 }
  0x41   :  { %v111_v0 = vmul.f32 %v196_v62, %v110_v63 }
  0x43   :  { %v112_v3 = vmul.f32 0.5, %v111_v0 }
  0x45   :  { %v113_v5 = vsub.f32 1.5, %v112_v3 }
  0x47   :  { %v114_v6 = vmul.f32 %v196_v62, %v113_v5 }
  0x49   :  { %v118_v9 = vsel %vm117_vm9, %v196_v62, %v114_v6 }
  0x4a   :  { %v125_v10 = vperm.slane %v118_v9, 0 }
  0x4c   :  { %v127_v11 = vmul.f32 %v125_v10, %v122_v7  ;;  %v128_v12 = vmul.f32 %v125_v10, %v123_v8 }
  0x4e   :  { %129 = vst.msk [vmem:[#allocation6] sm:$0xff] %vm41_vm0, %v127_v11 }
  0x4f   :  { %130 = vst.msk [vmem:[#allocation6 + $0x8] sm:$0xff] %vm41_vm0, %v128_v12 }
  0x50   :  { %146 = dma.vmem_to_hbm [thread:$0]  %s139_s6, 256, %s141_s20, [#allocation5], %s300_s26, %s300_s26, %s301_s27  }
  0x51   :  { %295 = dma.done.wait [#allocation5], 256  }
  0x52   :  { %296 = vsyncadd [#allocation5], 4294967040 }
  0x53   :  { %297 = dma.done.wait [#allocation8], 32  }
  0x54   :  { %298 = vsyncadd [#allocation8], 4294967264 }
  0x55   :  { %181 = vsyncpa [#allocation4], 1 }
  0x56   :  { %182 = vsyncpa [#allocation5], 1 }
  0x57   :  { %183 = vsyncpa [#allocation8], 1 }

</bundles_post_ra>
